<compile_context>
chip_gen: v7x
topology: tpu7x:2x2x1
jax: 0.10.0
libtpu: 0.0.40
codegen_flags: <defaults>
</compile_context>

<pallas_src>
import jax
import jax.numpy as jnp
from jax.experimental import pallas as pl
from jax.experimental.pallas import tpu as pltpu

NUM_BIN = 10      # inp_shape = num_bin = 10 input features
HIDDEN = 64
OUT = 1
LANE = 128        # TPU lane width


def mlp_kernel(x_ref, w1_ref, b1_ref, w23_ref, b23_ref, o_ref):
    # x_ref: (NUM_BIN, TB) -- batch on the lane axis (lane-dense).
    x = x_ref[...]

    # fc1 + ReLU : (64, 10) @ (10, TB) -> (64, TB) on the MXU.
    h1 = jnp.dot(w1_ref[...], x, preferred_element_type=jnp.float32) + b1_ref[...]
    h1 = jnp.maximum(h1, 0.0)

    # Dropout: identity (eval mode). Flatten: no-op on 2D input.

    # fc2·fc3 folded offline into a single (64,1) vector: VPU multiply +
    # cross-sublane reduce (XLU) keeps the MXU free and the output lane-dense.
    out = jnp.sum(w23_ref[...] * h1, axis=0, keepdims=True) + b23_ref[0, 0]
    o_ref[...] = jnp.maximum(out, 0.0).astype(o_ref.dtype)


def mlp_forward(x, w1, b1, w2, b2, w3, b3, *, tb=2048):
    """x: (B, 10). Weights/biases in PyTorch-native layout:
       w1 (64,10), b1 (64,), w2 (64,64), b2 (64,), w3 (1,64), b3 (1,).
       Returns (B, 1), matching the PyTorch module's eval forward."""
    B, F = x.shape
    assert F == NUM_BIN

    # --- offline algebraic fold of fc2·fc3 (no nonlinearity in between) ---
    w23 = w3 @ w2                       # (1, 64)
    b23 = w3 @ b2 + b3                  # (1,)
    w23_col = w23.T.astype(jnp.float32)             # (64, 1)
    b23_s = b23.reshape(1, 1).astype(jnp.float32)   # scalar -> SMEM
    b1_col = b1.reshape(HIDDEN, 1).astype(jnp.float32)
    w1_f = w1.astype(jnp.float32)

    # --- lane-dense layout: batch on the lane (last) axis ---
    # Batch tile TB: multiple of 128, capped at `tb`; pad B up to a multiple.
    tb_aligned = pl.cdiv(max(B, 1), LANE) * LANE
    TB = min(tb, tb_aligned)
    Bp = pl.cdiv(B, TB) * TB
    x_t = jnp.pad(x.astype(jnp.float32), ((0, Bp - B), (0, 0))).T   # (F, Bp)

    grid = (Bp // TB,)

    out_t = pl.pallas_call(
        mlp_kernel,
        out_shape=jax.ShapeDtypeStruct((OUT, Bp), jnp.float32),
        grid=grid,
        in_specs=[
            pl.BlockSpec((F, TB), lambda i: (0, i)),                 # x tile
            pl.BlockSpec((HIDDEN, F), lambda i: (0, 0)),             # w1 (resident)
            pl.BlockSpec((HIDDEN, 1), lambda i: (0, 0)),             # b1 (resident)
            pl.BlockSpec((HIDDEN, 1), lambda i: (0, 0)),             # w23 (resident)
            pl.BlockSpec(memory_space=pltpu.MemorySpace.SMEM),       # b23 scalar
        ],
        out_specs=pl.BlockSpec((OUT, TB), lambda i: (0, i)),
        compiler_params=pltpu.CompilerParams(
            dimension_semantics=("parallel",)),                      # v7x: 2 TCs
    )(x_t, w1_f, b1_col, w23_col, b23_s)

    return out_t[:, :B].T                                            # (B, 1)


def init_linear(key, fan_in, fan_out):
    # PyTorch-default uniform(-1/sqrt(fan_in), 1/sqrt(fan_in)); PyTorch-native
    # weight layout (out_features, in_features).
    kw, kb = jax.random.split(key)
    bound = 1.0 / jnp.sqrt(jnp.float32(fan_in))
    w = jax.random.uniform(kw, (fan_out, fan_in), jnp.float32, -bound, bound)
    b = jax.random.uniform(kb, (fan_out,), jnp.float32, -bound, bound)
    return w, b


def reference(x, w1, b1, w2, b2, w3, b3):
    h1 = jnp.maximum(x @ w1.T + b1, 0.0)
    h2 = h1 @ w2.T + b2
    h3 = h2 @ w3.T + b3
    return jnp.maximum(h3, 0.0)


if __name__ == "__main__":
    key = jax.random.PRNGKey(0)
    kx, k1, k2, k3 = jax.random.split(key, 4)

    B = 8
    x = jax.random.normal(kx, (B, NUM_BIN), jnp.float32)

    w1, b1 = init_linear(k1, NUM_BIN, HIDDEN)
    w2, b2 = init_linear(k2, HIDDEN, HIDDEN)
    w3, b3 = init_linear(k3, HIDDEN, OUT)

    out = mlp_forward(x, w1, b1, w2, b2, w3, b3)
    out = jax.block_until_ready(out)

    ref = reference(x, w1, b1, w2, b2, w3, b3)
    assert out.shape == (B, OUT)
    # fc2·fc3 fold reorders fp accumulation -> allow ~1e-4 tolerance.
    assert jnp.allclose(out, ref, atol=1e-4, rtol=1e-4), "mismatch vs JAX reference"

    print("KERNEL_OK")
</pallas_src>

<mosaic_0001>
module attributes {stable_mosaic.version = 11 : i64} {
  func.func @mlp_kernel(%arg0: i32, %arg1: memref<10x128xf32, #tpu.memory_space<vmem>>, %arg2: memref<64x10xf32, #tpu.memory_space<vmem>>, %arg3: memref<64x1xf32, #tpu.memory_space<vmem>>, %arg4: memref<64x1xf32, #tpu.memory_space<vmem>>, %arg5: memref<1x1xf32, #tpu.memory_space<smem>>, %arg6: memref<1x128xf32, #tpu.memory_space<vmem>>) attributes {dimension_semantics = [#tpu.dimension_semantics<parallel>], iteration_bounds = array<i64: 1>, scalar_prefetch = 0 : i64, scratch_operands = 0 : i64, tpu.core_type = #tpu.core_type<tc>, window_params = [{transform_indices = @transform_0, window_bounds = array<i64: 10, 128>}, {pipeline_mode = #tpu.pipeline_mode<synchronous>, transform_indices = @transform_1, window_bounds = array<i64: 64, 10>}, {pipeline_mode = #tpu.pipeline_mode<synchronous>, transform_indices = @transform_2, window_bounds = array<i64: 64, 1>}, {pipeline_mode = #tpu.pipeline_mode<synchronous>, transform_indices = @transform_3, window_bounds = array<i64: 64, 1>}, {transform_indices = @transform_4, window_bounds = array<i64: 1, 1>}, {transform_indices = @transform_5, window_bounds = array<i64: 1, 128>}]} {
    %c0 = arith.constant 0 : index
    %c0_0 = arith.constant 0 : index
    %0 = vector.load %arg1[%c0, %c0_0] : memref<10x128xf32, #tpu.memory_space<vmem>>, vector<10x128xf32>
    %c0_1 = arith.constant 0 : index
    %c0_2 = arith.constant 0 : index
    %1 = vector.load %arg2[%c0_1, %c0_2] : memref<64x10xf32, #tpu.memory_space<vmem>>, vector<64x10xf32>
    %cst = arith.constant dense<0.000000e+00> : vector<64x128xf32>
    %2 = tpu.matmul %1, %0, %cst {dimension_numbers = #tpu.dot_dimension_numbers<[1], [0], [0], [1], [0, 0, 1, 1], [], []>} : vector<64x10xf32>, vector<10x128xf32>, vector<64x128xf32> -> vector<64x128xf32>
    %c0_3 = arith.constant 0 : index
    %c0_4 = arith.constant 0 : index
    %3 = vector.load %arg3[%c0_3, %c0_4] : memref<64x1xf32, #tpu.memory_space<vmem>>, vector<64x1xf32>
    %4 = vector.broadcast %3 : vector<64x1xf32> to vector<64x128xf32>
    %5 = arith.addf %2, %4 : vector<64x128xf32>
    %cst_5 = arith.constant 0.000000e+00 : f32
    %6 = vector.broadcast %cst_5 : f32 to vector<64x128xf32>
    %7 = arith.maximumf %5, %6 : vector<64x128xf32>
    %c0_6 = arith.constant 0 : index
    %c0_7 = arith.constant 0 : index
    %8 = vector.load %arg4[%c0_6, %c0_7] : memref<64x1xf32, #tpu.memory_space<vmem>>, vector<64x1xf32>
    %9 = vector.broadcast %8 : vector<64x1xf32> to vector<64x128xf32>
    %10 = arith.mulf %9, %7 : vector<64x128xf32>
    %cst_8 = arith.constant dense<0.000000e+00> : vector<128xf32>
    %11 = vector.multi_reduction <add>, %10, %cst_8 [0] : vector<64x128xf32> to vector<128xf32>
    %12 = vector.shape_cast %11 : vector<128xf32> to vector<1x128xf32>
    %c0_9 = arith.constant 0 : index
    %c0_10 = arith.constant 0 : index
    %13 = memref.load %arg5[%c0_9, %c0_10] : memref<1x1xf32, #tpu.memory_space<smem>>
    %14 = vector.broadcast %13 : f32 to vector<1x128xf32>
    %15 = arith.addf %12, %14 : vector<1x128xf32>
    %cst_11 = arith.constant 0.000000e+00 : f32
    %16 = vector.broadcast %cst_11 : f32 to vector<1x128xf32>
    %17 = arith.maximumf %15, %16 : vector<1x128xf32>
    %c0_12 = arith.constant 0 : index
    %c0_13 = arith.constant 0 : index
    %18 = vector.load %arg6[%c0_12, %c0_13] : memref<1x128xf32, #tpu.memory_space<vmem>>, vector<1x128xf32>
    tpu.vector_store %arg6[%c0_12, %c0_13], %17 {strides = array<i32>} : memref<1x128xf32, #tpu.memory_space<vmem>>, vector<1x128xf32>,
    return
  }
  func.func @transform_0(%arg0: i32) -> (i32, i32) {
    %c0_i32 = arith.constant 0 : i32
    %c0_i32_0 = arith.constant 0 : i32
    return %c0_i32, %arg0 : i32, i32
  }
  func.func @transform_1(%arg0: i32) -> (i32, i32) {
    %c0_i32 = arith.constant 0 : i32
    %c0_i32_0 = arith.constant 0 : i32
    %c0_i32_1 = arith.constant 0 : i32
    return %c0_i32, %c0_i32_0 : i32, i32
  }
  func.func @transform_2(%arg0: i32) -> (i32, i32) {
    %c0_i32 = arith.constant 0 : i32
    %c0_i32_0 = arith.constant 0 : i32
    %c0_i32_1 = arith.constant 0 : i32
    return %c0_i32, %c0_i32_0 : i32, i32
  }
  func.func @transform_3(%arg0: i32) -> (i32, i32) {
    %c0_i32 = arith.constant 0 : i32
    %c0_i32_0 = arith.constant 0 : i32
    %c0_i32_1 = arith.constant 0 : i32
    return %c0_i32, %c0_i32_0 : i32, i32
  }
  func.func @transform_4(%arg0: i32) -> (i32, i32) {
    %c0_i32 = arith.constant 0 : i32
    %c0_i32_0 = arith.constant 0 : i32
    %c0_i32_1 = arith.constant 0 : i32
    return %c0_i32, %c0_i32_0 : i32, i32
  }
  func.func @transform_5(%arg0: i32) -> (i32, i32) {
    %c0_i32 = arith.constant 0 : i32
    %c0_i32_0 = arith.constant 0 : i32
    return %c0_i32, %arg0 : i32, i32
  }
}

</mosaic_0001>

<bundles_post_ra>
// kernel: tpu_custom_call.1
= control target key start
LH: loop header
LB: loop body
LE: loop exit
PB: predicated region body
PF: predicated region fallthrough
CT: control target
= control target key end

     0   :  { %vm105_vm0 = vcmask 1041408   ;;  %vm382_vm1 = vmmov 1   ;;  %vm80_vm3 = vcmask 80896   ;;  %v383_v11 = vmov 0   ;;  %s516_s0 = inlined_call_operand.vmem [shape: f32[10,128], index: 0, kind: input, shape index: {}]   ;;  %s517_s1 = inlined_call_operand.vmem [shape: f32[64,10], index: 1, kind: input, shape index: {}]   ;;  %s518_s2 = inlined_call_operand.vmem [shape: f32[64,1], index: 2, kind: input, shape index: {}]   ;;  %s519_s3 = inlined_call_operand.vmem [shape: f32[64,1], index: 3, kind: input, shape index: {}]   ;;  %s520_s4 = inlined_call_operand.<no memory space> [shape: f32[1,1], index: 4, kind: input, shape index: {}]   ;;  %s521_s5 = inlined_call_operand.hbm [shape: f32[1,128], index: 5, kind: output, shape index: {}]  }
   0x1   :  { %v22_v0 = vld [vmem:[%s516_s0] sm:$0xff]  ;;  %v23_v1 = vld [vmem:[%s516_s0 + $0x8] sm:$0x3]  ;;  %vm346_vm2 = vmpackc.low %vm105_vm0, %vm382_vm1  ;;  %356 = vset.pattern.permute.xlu0 %v383_v11  ;;  %357 = vset.pattern.permute.xlu1 %v383_v11 }
   0x2   :  { %v24_v2 = vld [vmem:[%s517_s1] sm:$0xff]  ;;  %v345_v3 = vpack.c.bf16 %v23_v1, %v22_v0  ;;  %v25_v6 = vld [vmem:[%s517_s1 + $0x8] sm:$0xff]  ;;  %v34_v8 = vld [vmem:[%s518_s2 + $0x10] sm:$0xff] }
   0x3   :  { %v28_v4 = vld [vmem:[%s517_s1 + $0x20] sm:$0xff]  ;;  %333 = vmatprep.mubr.msk.f32.mxu0 %vm80_vm3, %v24_v2  ;;  %v29_v7 = vld [vmem:[%s517_s1 + $0x28] sm:$0xff]  ;;  %v26_v9 = vld [vmem:[%s517_s1 + $0x10] sm:$0xff]  ;;  %52 = vperm.xlu1 %357, %v34_v8  }
   0x4   :  { %339 = vmatprep.mubr.msk.f32.mxu1 %vm80_vm3, %v28_v4  ;;  %347 = vmatprep.subr.msk.bf16.mxu0 %vm346_vm2, %v345_v3  ;;  %v32_v5 = vld [vmem:[%s518_s2] sm:$0xff]  ;;  %v30_v10 = vld [vmem:[%s517_s1 + $0x30] sm:$0xff]  ;;  %v33_v12 = vld [vmem:[%s518_s2 + $0x8] sm:$0xff] }
   0x5   :  { %351 = vmatprep.subr.msk.bf16.mxu1 %vm346_vm2, %v345_v3  ;;  %350 = vmatpush3.bf16.msk.msra.mxu0 %vm346_vm2, %v345_v3  ;;  %v35_v13 = vld [vmem:[%s518_s2 + $0x18] sm:$0xff] }
   0x6   :  { %352 = vmatpush3.bf16.msk.msra.mxu1 %vm346_vm2, %v345_v3  ;;  %42 = vperm.xlu0 %356, %v32_v5   ;;  %v27_v14 = vld [vmem:[%s517_s1 + $0x18] sm:$0xff] }
   0x7   :  { %v31_v15 = vld [vmem:[%s517_s1 + $0x38] sm:$0xff] }
   0x8   :  { %334 = vmatmul.mubr.msk.f32.vlgmr.msra.gmra.mrb[0].mxu0 %vm80_vm3, %v25_v6 }
   0x9   :  { %340 = vmatmul.mubr.msk.f32.vlgmr.msra.gmra.mrb[0].mxu1 %vm80_vm3, %v29_v7  ;;  %336 = vmatprep.mubr.msk.f32.mxu0 %vm80_vm3, %v26_v9 }
   0xa   :  { %342 = vmatprep.mubr.msk.f32.mxu1 %vm80_vm3, %v30_v10 }
   0xb   :  { %11 = vsyncpa [#allocation4], 0  ;;  %47 = vperm.xlu0 %356, %v33_v12   ;;  %57 = vperm.xlu1 %357, %v35_v13   ;;  %v222_v16 = vld [vmem:[%s519_s3] sm:$0xff]  ;;  %v223_v17 = vld [vmem:[%s519_s3 + $0x8] sm:$0xff]  ;;  %s384_s17 = smov [#allocation3]  }
   0xc   :  { %337 = vmatmul.mubr.msk.f32.gmra.mrb[2].mxu0 %vm80_vm3, %v27_v14  ;;  %v36_v18 = vld [vmem:[%s518_s2 + $0x20] sm:$0xff]  ;;  %v224_v19 = vld [vmem:[%s519_s3 + $0x10] sm:$0xff]  ;;  %v37_v20 = vld [vmem:[%s518_s2 + $0x28] sm:$0xff]  ;;  %s302_s18 = sshll.u32 %s384_s17, 4  ;;  %s303_s18 = int_to_ptr.vmem [resolvable:$true] %s302_s18 }
   0xd   :  { %343 = vmatmul.mubr.msk.f32.gmra.mrb[2].mxu1 %vm80_vm3, %v31_v15  ;;  %v225_v21 = vld [vmem:[%s519_s3 + $0x18] sm:$0xff]  ;;  %v38_v22 = vld [vmem:[%s518_s2 + $0x30] sm:$0xff]  ;;  %v226_v23 = vld [vmem:[%s519_s3 + $0x20] sm:$0xff]  ;;  %s358_s19 = scalar_lea.vmem %s303_s18, 16  ;;  %s362_s20 = scalar_lea.vmem %s303_s18, 32 }
   0xe   :  { %v39_v24 = vld [vmem:[%s518_s2 + $0x38] sm:$0xff]  ;;  %v227_v25 = vld [vmem:[%s519_s3 + $0x28] sm:$0xff]  ;;  %v228_v26 = vld [vmem:[%s519_s3 + $0x30] sm:$0xff]  ;;  %p359_p0 = scmp.ne.s32.totalorder %s303_s18, %s358_s19  ;;  %p363_p1 = scmp.lt.s32.totalorder %s303_s18, %s303_s18 }
   0xf   :  { %232 = vperm.xlu0 %356, %v222_v16   ;;  %237 = vperm.xlu1 %357, %v223_v17   ;;  %v229_v27 = vld [vmem:[%s519_s3 + $0x38] sm:$0xff]  ;;  %p364_p2 = scmp.lt.s32.totalorder %s362_s20, %s358_s19 }
  0x11   :  { %p365_p3 = por %p364_p2, %p363_p1 }
  0x13   :  { %62 = vperm.xlu0 %356, %v36_v18   ;;  %242 = vperm.xlu1 %357, %v224_v19   ;;  %p366_p4 = pnand %p365_p3, %p359_p0 }
  0x17   :  { %67 = vperm.xlu0 %356, %v37_v20   ;;  %247 = vperm.xlu1 %357, %v225_v21  }
  0x1b   :  { %72 = vperm.xlu0 %356, %v38_v22   ;;  %252 = vperm.xlu1 %357, %v226_v23  }
  0x1f   :  { %77 = vperm.xlu0 %356, %v39_v24   ;;  %257 = vperm.xlu1 %357, %v227_v25   ;;  %v292_v24 = vstv %s520_s4 }
  0x23   :  { %262 = vperm.xlu0 %356, %v228_v26   ;;  %267 = vperm.xlu1 %357, %v229_v27  }
  0x82   :  { %v53_v29 = vpop.permute.xlu1 %52 }
  0x85   :  { %v43_v28 = vpop.permute.xlu0 %42 }
  0x8a   :  { %v48_v30 = vpop.permute.xlu0 %47  ;;  %v58_v31 = vpop.permute.xlu1 %57 }
  0x8e   :  { %v233_v32 = vpop.permute.xlu0 %232  ;;  %v238_v33 = vpop.permute.xlu1 %237 }
  0x92   :  { %v63_v34 = vpop.permute.xlu0 %62  ;;  %v243_v35 = vpop.permute.xlu1 %242 }
  0x96   :  { %v68_v36 = vpop.permute.xlu0 %67  ;;  %v248_v37 = vpop.permute.xlu1 %247 }
  0x9a   :  { %v73_v44 = vpop.permute.xlu0 %72  ;;  %v253_v56 = vpop.permute.xlu1 %252 }
  0x9e   :  { %v78_v0 = vpop.permute.xlu0 %77  ;;  %v258_v5 = vpop.permute.xlu1 %257 }
  0xa2   :  { %v263_v12 = vpop.permute.xlu0 %262  ;;  %v268_v15 = vpop.permute.xlu1 %267 }
  0xdb   :  { %v335_v38 = vpop.f32.mrb[0].mxu0 }
  0xdc   :  { %v341_v39 = vpop.f32.mrb[0].mxu1  ;;  %v181_v40 = vadd.f32 %v335_v38, %v48_v30  ;;  %v175_v41 = vpop.f32.mrb[1].mxu0 }
  0xdd   :  { %v195_v42 = vpop.f32.mrb[1].mxu1  ;;  %v176_v43 = vadd.f32 %v175_v41, %v43_v28  ;;  %v201_v57 = vadd.f32 %v341_v39, %v68_v36 }
  0xde   :  { %v215_v45 = vmax.f32 %v181_v40, 0.0  ;;  %v196_v54 = vadd.f32 %v195_v42, %v63_v34 }
  0xdf   :  { %v214_v46 = vmax.f32 %v176_v43, 0.0  ;;  %v338_v47 = vpop.f32.mrb[2].mxu0  ;;  %v219_v1 = vmax.f32 %v201_v57, 0.0 }
  0xe0   :  { %v344_v48 = vpop.f32.mrb[2].mxu1  ;;  %v271_v49 = vmul.f32 %v238_v33, %v215_v45  ;;  %v191_v50 = vadd.f32 %v338_v47, %v58_v31  ;;  %v185_v51 = vpop.f32.mrb[3].mxu0  ;;  %v218_v61 = vmax.f32 %v196_v54, 0.0 }
  0xe1   :  { %v205_v52 = vpop.f32.mrb[3].mxu1  ;;  %v270_v53 = vmul.f32 %v233_v32, %v214_v46  ;;  %v186_v55 = vadd.f32 %v185_v51, %v53_v29  ;;  %v211_v3 = vadd.f32 %v344_v48, %v78_v0  ;;  %v275_v9 = vmul.f32 %v258_v5, %v219_v1 }
  0xe2   :  { %v217_v59 = vmax.f32 %v191_v50, 0.0  ;;  %v206_v63 = vadd.f32 %v205_v52, %v73_v44  ;;  %v274_v6 = vmul.f32 %v253_v56, %v218_v61 }
  0xe3   :  { %v278_v58 = vadd.f32 %v271_v49, %v270_v53  ;;  %v216_v60 = vmax.f32 %v186_v55, 0.0  ;;  %v221_v10 = vmax.f32 %v211_v3, 0.0 }
  0xe4   :  { %v273_v2 = vmul.f32 %v248_v37, %v217_v59  ;;  %v220_v8 = vmax.f32 %v206_v63, 0.0 }
  0xe5   :  { %v272_v62 = vmul.f32 %v243_v35, %v216_v60  ;;  %v277_v16 = vmul.f32 %v268_v15, %v221_v10 }
  0xe6   :  { %v276_v13 = vmul.f32 %v263_v12, %v220_v8 }
  0xe7   :  { %v279_v4 = vadd.f32 %v278_v58, %v272_v62 }
  0xe9   :  { %v280_v7 = vadd.f32 %v279_v4, %v273_v2 }
  0xeb   :  { %v281_v11 = vadd.f32 %v280_v7, %v274_v6 }
  0xed   :  { %v282_v14 = vadd.f32 %v281_v11, %v275_v9 }
  0xef   :  { %v283_v17 = vadd.f32 %v282_v14, %v276_v13 }
  0xf1   :  { %v284_v18 = vadd.f32 %v283_v17, %v277_v16 }
  0xf3   :  { %v285_v19 = vrot.slane %v284_v18, 4 }
  0xf5   :  { %v286_v20 = vadd.f32 %v285_v19, %v284_v18 }
  0xf7   :  { %v287_v21 = vrot.slane %v286_v20, 2 }
  0xf9   :  { %v288_v22 = vadd.f32 %v287_v21, %v286_v20 }
  0xfb   :  { %v289_v23 = vrot.slane %v288_v22, 1 }
  0xfd   :  { %v290_v25 = vadd.f32 %v289_v23, %v288_v22 }
  0xff   :  { %v293_v26 = vadd.f32 %v292_v24, %v290_v25 }
 0x101   :  { %v294_v27 = vmax.f32 %v293_v26, 0.0 }
 0x103   :  { %295 = vst [vmem:[#allocation3] sm:$0x1] %v294_v27 }
 0x104   :  { %369 = shalt.err (!%p366_p4)
}
 0x105   :  { %s370_s23 = scalar_lea.hbm %s521_s5, 16 }
 0x106   :  { %p371_p5 = scmp.ne.s32.totalorder %s521_s5, %s370_s23  ;;  %p374_p6 = scmp.lt.u32.totalorder %s370_s23, %s521_s5 }
 0x108   :  { %p376_p7 = pnand %p374_p6, %p371_p5 }
 0x10a   :  { %379 = shalt.err (!%p376_p7)
}
 0x10b   :  { %305 = dma.vmem_to_hbm [thread:$0]  %s303_s18, 16, %s521_s5, [#allocation4]  }
 0x10c   :  { %380 = dma.done.wait [#allocation4], 16  }
 0x10d   :  { %381 = vsyncadd [#allocation4], 4294967280 }
 0x10e   :  { %309 = vsyncpa [#allocation4], 1 }

</bundles_post_ra>
